<compile_context>
chip_gen: v5e
topology: v5e:2x2
jax: 0.10.0
libtpu: 0.0.40
codegen_flags: <defaults>
</compile_context>

<pallas_src>
import functools

import jax
import jax.numpy as jnp
from jax.experimental import pallas as pl
from jax.experimental.pallas import tpu as pltpu


def _concat_add_pool_project_kernel(hs_ref, batch_ref, w_ref, bias_ref,
                                    out_ref, onehot_ref, acc_ref,
                                    *, shared_batches):
    b = pl.program_id(0)          # batch-row tile   ("parallel")
    n = pl.program_id(1)          # node chunk       (reduction)
    l = pl.program_id(2)          # layer            (reduction, innermost)
    tb, tn = onehot_ref.shape

    # Initialize the resident accumulator with the bias for this batch tile.
    @pl.when((n == 0) & (l == 0))
    def _init():
        acc_ref[...] = jnp.zeros_like(acc_ref) + bias_ref[...].astype(jnp.float32)

    # One-hot scatter matrix for this (batch tile, node chunk):
    #   onehot[r, c] = (batches[c] == b * tb + r)
    def _build_onehot():
        rows = jax.lax.broadcasted_iota(jnp.int32, (tb, tn), 0) + b * tb
        onehot_ref[...] = (rows == batch_ref[...]).astype(onehot_ref.dtype)

    if shared_batches:
        # Same batch vector for every layer: build once per node chunk
        # (layer is the innermost grid axis) and reuse it for l = 1..L-1.
        @pl.when(l == 0)
        def _():
            _build_onehot()
    else:
        _build_onehot()

    # Pooling on the MXU in hs's native dtype (bf16 fast path), f32 accumulate.
    pooled = jnp.dot(onehot_ref[...], hs_ref[...],
                     preferred_element_type=jnp.float32)            # [tb, D] f32

    # This layer's chunk of the concat-Linear projection: pooled @ W_l^T.
    acc_ref[...] += jnp.dot(pooled, w_ref[...].astype(jnp.float32),
                            preferred_element_type=jnp.float32)     # [tb, D] f32

    @pl.when((n == pl.num_programs(1) - 1) & (l == pl.num_programs(2) - 1))
    def _finalize():
        out_ref[...] = acc_ref[...].astype(out_ref.dtype)


def _round_up(x, m):
    return (x + m - 1) // m * m


def last_readout_concate_add_pool(hs, batches, weight_t, bias, batch_size,
                                  *, tn=None, tb=None, vmem_limit_bytes=None):
    """concate_add_pool readout.

    hs:        [L, N, D]  per-layer node embeddings (f32 or bf16).
    batches:   [N] int32 (graph ids shared across layers) or [L, N] int32
               (per-layer ids). ids < 0 or >= batch_size are ignored (padding).
    weight_t:  [L*D, D]   transposed torch Linear weight (weight.T), built once.
    bias:      [D]
    Returns    [batch_size, D] in hs.dtype.
    """
    L, N, D = hs.shape
    assert weight_t.shape == (L * D, D), weight_t.shape
    assert bias.shape == (D,), bias.shape
    assert D % 8 == 0, "emb_dim must be a multiple of 8"

    if batches.ndim == 1:
        assert batches.shape == (N,), batches.shape
        shared = True
        batches_3d = batches.reshape(1, 1, N).astype(jnp.int32)
    else:
        assert batches.shape == (L, N), batches.shape
        shared = False
        batches_3d = batches.reshape(L, 1, N).astype(jnp.int32)
    bias_2d = bias.reshape(1, D)

    # Node-chunk tile: whole layer when small, else a 128-multiple dividing N.
    if tn is None:
        tn = N
        if N > 4096:
            for cand in (4096, 2048, 1024, 512, 256, 128):
                if N % cand == 0:
                    tn = cand
                    break
    assert N % tn == 0 and (tn == N or tn % 128 == 0), (N, tn)

    # Batch-row tile: single tile by default; pass tb (multiple of 8/16) to
    # split output rows across TensorCores (v7x has 2 cores) when B is large.
    if tb is None:
        tb = batch_size
    assert batch_size % tb == 0 and (tb == batch_size or tb % 8 == 0), \
        (batch_size, tb)

    out_dtype = hs.dtype
    hs_b = jnp.dtype(hs.dtype).itemsize
    w_b = jnp.dtype(weight_t.dtype).itemsize
    o_b = jnp.dtype(out_dtype).itemsize

    # VMEM budget: double-buffered pipeline blocks + resident scratch, padded to
    # native (8 x 128) tiles, with 2x headroom.  Defaults stay well under
    # v7x's 64 MiB; raise tn / vmem_limit_bytes on v5e/v6e (128 MiB) if desired.
    if vmem_limit_bytes is None:
        est = 0
        est += 2 * _round_up(tn, 8) * _round_up(D, 128) * hs_b            # hs
        est += 2 * 8 * _round_up(tn, 128) * 4                             # batches
        est += 2 * _round_up(D, 8) * _round_up(D, 128) * w_b              # weight
        est += 2 * _round_up(tb, 8) * _round_up(D, 128) * o_b             # out
        est += 2 * 8 * _round_up(D, 128) * 4                              # bias
        est += _round_up(tb, 8) * _round_up(tn, 128) * hs_b               # onehot
        est += _round_up(tb, 8) * _round_up(D, 128) * 4                   # acc
        vmem_limit_bytes = max(32 << 20, 2 * est)

    kernel = functools.partial(_concat_add_pool_project_kernel,
                               shared_batches=shared)

    batch_idx = ((lambda b, n, l: (0, 0, n)) if shared
                 else (lambda b, n, l: (l, 0, n)))

    return pl.pallas_call(
        kernel,
        out_shape=jax.ShapeDtypeStruct((batch_size, D), out_dtype),
        grid=(batch_size // tb, N // tn, L),
        in_specs=[
            pl.BlockSpec((None, tn, D), lambda b, n, l: (l, n, 0)),  # hs chunk
            pl.BlockSpec((None, 1, tn), batch_idx),                  # graph ids
            pl.BlockSpec((D, D), lambda b, n, l: (l, 0)),            # W_l^T (zero-copy row chunk)
            pl.BlockSpec((1, D), lambda b, n, l: (0, 0)),            # bias (resident)
        ],
        out_specs=pl.BlockSpec((tb, D), lambda b, n, l: (b, 0)),     # resident out tile
        scratch_shapes=[
            pltpu.VMEM((tb, tn), hs.dtype),        # cached one-hot
            pltpu.VMEM((tb, D), jnp.float32),      # f32 accumulator
        ],
        compiler_params=pltpu.CompilerParams(
            dimension_semantics=("parallel", "arbitrary", "arbitrary"),
            vmem_limit_bytes=int(vmem_limit_bytes)),
    )(hs, batches_3d, weight_t, bias_2d)


def _reference(hs, batches, weight, bias, batch_size):
    """Pure-JAX reference mirroring the PyTorch forward (torch weight layout)."""
    L, N, D = hs.shape
    hs32 = hs.astype(jnp.float32)
    if batches.ndim == 1:
        batches = jnp.broadcast_to(batches[None, :], (L, N))
    pooled = [jax.ops.segment_sum(hs32[l], batches[l], num_segments=batch_size)
              for l in range(L)]
    g = jnp.concatenate(pooled, axis=1)                              # [B, L*D]
    return g @ weight.astype(jnp.float32).T + bias.astype(jnp.float32)


if __name__ == "__main__":
    keys = jax.random.split(jax.random.PRNGKey(0), 8)

    # ---- Config 1: shipped module config (pool_num_layer=2, emb_dim=32) -----
    pool_num_layer, D, N, B = 2, 32, 16, 4
    L = pool_num_layer + 1
    hs = jax.random.normal(keys[0], (L, N, D), jnp.float32)
    batches = jnp.repeat(jnp.arange(B, dtype=jnp.int32), N // B)     # shared [N]
    bound = 1.0 / float(L * D) ** 0.5
    weight = jax.random.uniform(keys[1], (D, L * D), jnp.float32, -bound, bound)
    bias = jax.random.uniform(keys[2], (D,), jnp.float32, -bound, bound)
    weight_t = weight.T         # store the Linear weight transposed once

    out = jax.block_until_ready(
        last_readout_concate_add_pool(hs, batches, weight_t, bias, B))
    ref = _reference(hs, batches, weight, bias, B)
    assert out.shape == (B, D)
    assert jnp.allclose(out, ref, atol=1e-4, rtol=1e-4), "config-1 mismatch"

    # ---- Config 2: bf16 hs, per-layer ids, tiled nodes + parallel batch rows -
    L2, D2, N2, B2 = 4, 32, 256, 32
    hs2 = jax.random.normal(keys[3], (L2, N2, D2), jnp.float32).astype(jnp.bfloat16)
    batches2 = jax.random.randint(keys[4], (L2, N2), 0, B2, dtype=jnp.int32)
    batches2 = batches2.at[:, -4:].set(B2)   # padding ids >= batch_size -> dropped
    bound2 = 1.0 / float(L2 * D2) ** 0.5
    weight2 = jax.random.uniform(keys[5], (D2, L2 * D2), jnp.float32, -bound2, bound2)
    bias2 = jax.random.uniform(keys[6], (D2,), jnp.float32, -bound2, bound2)

    out2 = jax.block_until_ready(
        last_readout_concate_add_pool(hs2, batches2, weight2.T, bias2, B2,
                                      tn=128, tb=16))
    ref2 = _reference(hs2, batches2, weight2, bias2, B2)
    assert out2.shape == (B2, D2) and out2.dtype == jnp.bfloat16
    assert jnp.allclose(out2.astype(jnp.float32), ref2, atol=2e-2, rtol=2e-2), \
        "config-2 mismatch"

    print("KERNEL_OK")
</pallas_src>

<mosaic_0001>
module attributes {stable_mosaic.version = 11 : i64} {
  func.func @_concat_add_pool_project_kernel(%arg0: i32, %arg1: i32, %arg2: i32, %arg3: memref<1x16x32xf32, #tpu.memory_space<vmem>>, %arg4: memref<1x1x16xi32, #tpu.memory_space<vmem>>, %arg5: memref<32x32xf32, #tpu.memory_space<vmem>>, %arg6: memref<1x32xf32, #tpu.memory_space<vmem>>, %arg7: memref<4x32xf32, #tpu.memory_space<vmem>>, %arg8: memref<4x16xf32, #tpu.memory_space<vmem>>, %arg9: memref<4x32xf32, #tpu.memory_space<vmem>>) attributes {dimension_semantics = [#tpu.dimension_semantics<parallel>, #tpu.dimension_semantics<arbitrary>, #tpu.dimension_semantics<arbitrary>], iteration_bounds = array<i64: 1, 1, 3>, scalar_prefetch = 0 : i64, scratch_operands = 2 : i64, tpu.core_type = #tpu.core_type<tc>, window_params = [{transform_indices = @transform_0, window_bounds = array<i64: 1, 16, 32>}, {transform_indices = @transform_1, window_bounds = array<i64: 1, 1, 16>}, {transform_indices = @transform_2, window_bounds = array<i64: 32, 32>}, {pipeline_mode = #tpu.pipeline_mode<synchronous>, transform_indices = @transform_3, window_bounds = array<i64: 1, 32>}, {transform_indices = @transform_4, window_bounds = array<i64: 4, 32>}]} {
    %c0_i32 = arith.constant 0 : i32
    %0 = arith.cmpi eq, %arg1, %c0_i32 : i32
    %c0_i32_0 = arith.constant 0 : i32
    %1 = arith.cmpi eq, %arg2, %c0_i32_0 : i32
    %2 = arith.andi %0, %1 : i1
    %3 = arith.extui %2 : i1 to i32
    %c0_i32_1 = arith.constant 0 : i32
    %4 = arith.cmpi ne, %3, %c0_i32_1 : i32
    scf.if %4 {
      %cst_17 = arith.constant 0.000000e+00 : f32
      %22 = vector.broadcast %cst_17 : f32 to vector<4x32xf32>
      %c0_18 = arith.constant 0 : index
      %c0_19 = arith.constant 0 : index
      %23 = vector.load %arg6[%c0_18, %c0_19] : memref<1x32xf32, #tpu.memory_space<vmem>>, vector<1x32xf32>
      %24 = vector.broadcast %23 : vector<1x32xf32> to vector<4x32xf32>
      %25 = arith.addf %22, %24 : vector<4x32xf32>
      %c0_20 = arith.constant 0 : index
      %c0_21 = arith.constant 0 : index
      %26 = vector.load %arg9[%c0_20, %c0_21] : memref<4x32xf32, #tpu.memory_space<vmem>>, vector<4x32xf32>
      tpu.vector_store %arg9[%c0_20, %c0_21], %25 {strides = array<i32>} : memref<4x32xf32, #tpu.memory_space<vmem>>, vector<4x32xf32>,
    } else {
    }
    %c0_i32_2 = arith.constant 0 : i32
    %5 = arith.cmpi eq, %arg2, %c0_i32_2 : i32
    %6 = arith.extui %5 : i1 to i32
    %c0_i32_3 = arith.constant 0 : i32
    %7 = arith.cmpi ne, %6, %c0_i32_3 : i32
    scf.if %7 {
      %22 = tpu.iota {dimensions = array<i32: 0>} : vector<4x16xi32>
      %c4_i32 = arith.constant 4 : i32
      %23 = arith.muli %arg0, %c4_i32 : i32
      %24 = vector.broadcast %23 : i32 to vector<4x16xi32>
      %25 = arith.addi %22, %24 : vector<4x16xi32>
      %c0_17 = arith.constant 0 : index
      %c0_18 = arith.constant 0 : index
      %c0_19 = arith.constant 0 : index
      %26 = vector.load %arg4[%c0_17, %c0_18, %c0_19] : memref<1x1x16xi32, #tpu.memory_space<vmem>>, vector<1x1x16xi32>
      %27 = vector.shape_cast %26 : vector<1x1x16xi32> to vector<1x16xi32>
      %28 = vector.broadcast %27 : vector<1x16xi32> to vector<4x16xi32>
      %29 = arith.cmpi eq, %25, %28 : vector<4x16xi32>
      %30 = arith.extui %29 : vector<4x16xi1> to vector<4x16xi32>
      %31 = arith.sitofp %30 : vector<4x16xi32> to vector<4x16xf32>
      %c0_20 = arith.constant 0 : index
      %c0_21 = arith.constant 0 : index
      %32 = vector.load %arg8[%c0_20, %c0_21] : memref<4x16xf32, #tpu.memory_space<vmem>>, vector<4x16xf32>
      tpu.vector_store %arg8[%c0_20, %c0_21], %31 {strides = array<i32>} : memref<4x16xf32, #tpu.memory_space<vmem>>, vector<4x16xf32>,
    } else {
    }
    %c0 = arith.constant 0 : index
    %c0_4 = arith.constant 0 : index
    %8 = vector.load %arg8[%c0, %c0_4] : memref<4x16xf32, #tpu.memory_space<vmem>>, vector<4x16xf32>
    %c0_5 = arith.constant 0 : index
    %c0_6 = arith.constant 0 : index
    %c0_7 = arith.constant 0 : index
    %9 = vector.load %arg3[%c0_5, %c0_6, %c0_7] : memref<1x16x32xf32, #tpu.memory_space<vmem>>, vector<1x16x32xf32>
    %10 = vector.shape_cast %9 : vector<1x16x32xf32> to vector<16x32xf32>
    %cst = arith.constant dense<0.000000e+00> : vector<4x32xf32>
    %11 = tpu.matmul %8, %10, %cst {dimension_numbers = #tpu.dot_dimension_numbers<[1], [0], [0], [1], [0, 0, 1, 1], [], []>} : vector<4x16xf32>, vector<16x32xf32>, vector<4x32xf32> -> vector<4x32xf32>
    %c0_8 = arith.constant 0 : index
    %c0_9 = arith.constant 0 : index
    %12 = vector.load %arg9[%c0_8, %c0_9] : memref<4x32xf32, #tpu.memory_space<vmem>>, vector<4x32xf32>
    %c0_10 = arith.constant 0 : index
    %c0_11 = arith.constant 0 : index
    %13 = vector.load %arg5[%c0_10, %c0_11] : memref<32x32xf32, #tpu.memory_space<vmem>>, vector<32x32xf32>
    %cst_12 = arith.constant dense<0.000000e+00> : vector<4x32xf32>
    %14 = tpu.matmul %11, %13, %cst_12 {dimension_numbers = #tpu.dot_dimension_numbers<[1], [0], [0], [1], [0, 0, 1, 1], [], []>} : vector<4x32xf32>, vector<32x32xf32>, vector<4x32xf32> -> vector<4x32xf32>
    %15 = arith.addf %12, %14 : vector<4x32xf32>
    %c0_13 = arith.constant 0 : index
    %c0_14 = arith.constant 0 : index
    %16 = vector.load %arg9[%c0_13, %c0_14] : memref<4x32xf32, #tpu.memory_space<vmem>>, vector<4x32xf32>
    tpu.vector_store %arg9[%c0_13, %c0_14], %15 {strides = array<i32>} : memref<4x32xf32, #tpu.memory_space<vmem>>, vector<4x32xf32>,
    %c0_i32_15 = arith.constant 0 : i32
    %17 = arith.cmpi eq, %arg1, %c0_i32_15 : i32
    %c2_i32 = arith.constant 2 : i32
    %18 = arith.cmpi eq, %arg2, %c2_i32 : i32
    %19 = arith.andi %17, %18 : i1
    %20 = arith.extui %19 : i1 to i32
    %c0_i32_16 = arith.constant 0 : i32
    %21 = arith.cmpi ne, %20, %c0_i32_16 : i32
    scf.if %21 {
      %c0_17 = arith.constant 0 : index
      %c0_18 = arith.constant 0 : index
      %22 = vector.load %arg9[%c0_17, %c0_18] : memref<4x32xf32, #tpu.memory_space<vmem>>, vector<4x32xf32>
      %c0_19 = arith.constant 0 : index
      %c0_20 = arith.constant 0 : index
      %23 = vector.load %arg7[%c0_19, %c0_20] : memref<4x32xf32, #tpu.memory_space<vmem>>, vector<4x32xf32>
      tpu.vector_store %arg7[%c0_19, %c0_20], %22 {strides = array<i32>} : memref<4x32xf32, #tpu.memory_space<vmem>>, vector<4x32xf32>,
    } else {
    }
    return
  }
  func.func @transform_0(%arg0: i32, %arg1: i32, %arg2: i32) -> (i32, i32, i32) {
    %c0_i32 = arith.constant 0 : i32
    %c0_i32_0 = arith.constant 0 : i32
    return %arg2, %arg1, %c0_i32 : i32, i32, i32
  }
  func.func @transform_1(%arg0: i32, %arg1: i32, %arg2: i32) -> (i32, i32, i32) {
    %c0_i32 = arith.constant 0 : i32
    %c0_i32_0 = arith.constant 0 : i32
    %c0_i32_1 = arith.constant 0 : i32
    return %c0_i32, %c0_i32_0, %arg1 : i32, i32, i32
  }
  func.func @transform_2(%arg0: i32, %arg1: i32, %arg2: i32) -> (i32, i32) {
    %c0_i32 = arith.constant 0 : i32
    %c0_i32_0 = arith.constant 0 : i32
    return %arg2, %c0_i32 : i32, i32
  }
  func.func @transform_3(%arg0: i32, %arg1: i32, %arg2: i32) -> (i32, i32) {
    %c0_i32 = arith.constant 0 : i32
    %c0_i32_0 = arith.constant 0 : i32
    %c0_i32_1 = arith.constant 0 : i32
    return %c0_i32, %c0_i32_0 : i32, i32
  }
  func.func @transform_4(%arg0: i32, %arg1: i32, %arg2: i32) -> (i32, i32) {
    %c0_i32 = arith.constant 0 : i32
    %c0_i32_0 = arith.constant 0 : i32
    return %arg0, %c0_i32 : i32, i32
  }
}

</mosaic_0001>

<bundles_post_ra>
// kernel: tpu_custom_call.1
= control target key start
LH: loop header
LB: loop body
LE: loop exit
PB: predicated region body
PF: predicated region fallthrough
CT: control target
= control target key end

     0   :  { %9 = vsyncpa [#allocation5], 0  ;;  %s587_s15 = smov 0   ;;  %s589_s16 = smov 0   ;;  %s640_s0 = inlined_call_operand.vmem [shape: f32[3,16,32], index: 0, kind: input, shape index: {}]   ;;  %s641_s1 = inlined_call_operand.vmem [shape: s32[1,1,16], index: 1, kind: input, shape index: {}]   ;;  %s642_s2 = inlined_call_operand.vmem [shape: f32[96,32], index: 2, kind: input, shape index: {}]   ;;  %s643_s3 = inlined_call_operand.vmem [shape: f32[1,32], index: 3, kind: input, shape index: {}]   ;;  %s644_s4 = inlined_call_operand.hbm [shape: f32[4,32], index: 4, kind: output, shape index: {}]  }
   0x1   :  { %s591_s17 = smov 0  }
   0x2 LB: > { %s448_s18 = sadd.s32 4294967295, %s558_s17   ;;  %s27_s19 = sadd.s32 1, %s554_s16  ;;  %s558_s17 = sphi %s591_s17, %s15_s17   ;;  %s554_s16 = sphi %s589_s16, %s646_s16   ;;  %s550_s15 = sphi %s587_s15, %s645_s15  }
   0x3   : > { %p28_p0 = scmp.ge.s32.totalorder %s27_s19, 3  ;;  %p452_p1 = scmp.ge.s32.totalorder %s558_s17, 1 }
   0x4   : > { %p208_p2 = scmp.lt.s32.totalorder %s558_s17, 4 }
   0x5   : > { %s648_s19 = smov (%p28_p0, %s27_s19), 0 }
   0x6   : > { %p209_p3 = pnand %p452_p1, %p208_p2 }
   0x7   : > { %p242_p4 = scmp.lt.s32.totalorder (!%p209_p3), %s550_s15, 2  ;;  %s455_s20 = sshll.u32 (!%p209_p3), %s550_s15, 2 }
   0x8   : > { %212 = sbr.rel (%p209_p3) target bundleno = 309 (0x135), region = 36  ;;  %p255_p5 = scmp.lt.s32.totalorder (!%p209_p3), %s455_s20, 11 }
   0x9   : > { %p261_p6 = scmp.eq.s32.totalorder (!%p209_p3), %s550_s15, 0 }
   0xd   : > { %s243_s21 = scalar_select %p242_p4, %s550_s15, 2  ;;  %v502_v0 = vld [vmem:[%s643_s3] ss:$0 sm:$0xff] (%p261_p6)  ;;  %vm271_vm0 = vcmask (%p261_p6), 257024  }
   0xe   : > { %s650_s20 = smov (!%p255_p5, %s455_s20), 11  ;;  %265 = sbr.rel (!%p261_p6) target bundleno = 19 (0x13), region = 40  ;;  %272 = vst.msk [vmem:[#allocation3] sm:$0xf] (%p261_p6), %vm271_vm0, %v502_v0 }
   0xf   : > { %s467_s22 = sshll.u32 %s243_s21, 4  ;;  %s456_s26 = sshll.u32 %s650_s20, 3 }
  0x10   : > { %s249_s25 = scalar_lea.vmem %s640_s0, %s467_s22  ;;  %s258_s29 = scalar_lea.vmem %s642_s2, %s456_s26 }
  0x13 PF: > { %p458_p7 = scmp.ne.s32.totalorder %s550_s15, 0 }
  0x15   : > { %275 = sbr.rel (%p458_p7) target bundleno = 33 (0x21), region = 44 }
  0x1a   : > { %v276_v1 = vlaneseq  ;;  %v503_v2 = vld [vmem:[%s641_s1] ss:$0 sm:$0xff]  ;;  %vm286_vm1 = vcmask 125952   ;;  %v560_v4 = vmov 0.0  }
  0x1c   : > { %v277_v3 = vshrl.u32 %v276_v1, 7 }
  0x1e   : > { %vm283_vm2 = vcmp.eq.s32.totalorder %v277_v3, %v503_v2 }
  0x1f   : > { %v459_v5 = vsel %vm283_vm2, 1.0, %v560_v4 }
  0x20   : > { %287 = vst.msk [vmem:[#allocation2] sm:$0xf] %vm286_vm1, %v459_v5 }
  0x21 PF: > { %v290_v6 = vld [vmem:[%s249_s25 + $0x8] sm:$0xff]  ;;  %v289_v7 = vld [vmem:[%s249_s25] sm:$0xff]  ;;  %vm291_vm3 = vcmask 130048   ;;  %v319_v9 = vld [vmem:[%s258_s29 + $0x18] sm:$0xff]  ;;  %vm320_vm4 = vcmask 261120   ;;  %p347_p8 = scmp.eq.s32.totalorder %s550_s15, 2 }
  0x22   : > { %309 = vmatpush.msra.mxu0 %v290_v6  ;;  %v318_v10 = vld [vmem:[%s258_s29 + $0x10] sm:$0xff]  ;;  %336 = vmatpush.msra.mxu1 %v319_v9  ;;  %v317_v11 = vld [vmem:[%s258_s29 + $0x8] sm:$0xff]  ;;  %v316_v12 = vld [vmem:[%s258_s29] sm:$0xff]  ;;  %vm345_vm5 = vcmask 257024  }
  0x23   : > { %v315_v14 = vld [vmem:[#allocation3] sm:$0xf] }
  0x24   : > { %310 = vmatpush.msra.mxu0 %v289_v7  ;;  %337 = vmatpush.msra.mxu1 %v318_v10 }
  0x26   : > { %338 = vmatpush.msra.mxu1 %v317_v11 }
  0x27   : > { %v288_v8 = vld [vmem:[#allocation2] sm:$0xf] }
  0x28   : > { %460 = vmatmul.msk.f32.vlgmr.msra.gmra.mxu0 %vm291_vm3, %v288_v8  ;;  %339 = vmatpush.msra.mxu1 %v316_v12 }
  0xa5   : > { %v312_v13 = vpop.f32.mrf.mxu0 }
  0xa6   : > { %461 = vmatmul.msk.f32.vlgmr.msra.gmra.mxu1 %vm320_vm4, %v312_v13 }
 0x122   : > { %351 = sbr.rel (!%p347_p8) target bundleno = 303 (0x12f), region = 48 }
 0x123   : > { %v341_v15 = vpop.f32.mrf.mxu1 }
 0x124   : > { %v344_v16 = vadd.f32 %v341_v15, %v315_v14 }
 0x126   : > { %346 = vst.msk [vmem:[#allocation3] sm:$0xf] %vm345_vm5, %v344_v16 }
 0x12d   : > { %v352_v17 = vld [vmem:[#allocation3] sm:$0xf] }
 0x12e   : > { %353 = vst.msk [vmem:[#allocation4] sm:$0xf] %vm345_vm5, %v352_v17 }
 0x12f PF: > { %p474_p9 = scmp.eq.s32.totalorder %s448_s18, 2  ;;  %s364_s10 = sshll.u32 %s644_s4, 4  ;;  %s365_s10 = int_to_ptr.hbm [resolvable:$true] %s364_s10 }
 0x130   : > { %s561_s11 = smov [#allocation4]  }
 0x131   : > { %s362_s12 = sshll.u32 %s561_s11, 4  ;;  %s363_s12 = int_to_ptr.vmem [resolvable:$true] %s362_s12 }
 0x132   : > { %471 = dma.vmem_to_hbm [thread:$0]  (%p474_p9), %s363_s12, 64, %s365_s10, [#allocation5]  }
 0x133   : > { %545 = dma.done.wait (%p474_p9), [#allocation5], 64  }
 0x134   : > { %547 = vsyncadd (%p474_p9), [#allocation5], 4294967232 }
 0x135 PF: > { %s15_s17 = sadd.s32 1, %s558_s17   ;;  %s645_s15 = smov %s554_s16 }
 0x136   : > { %p12_p10 = scmp.ge.s32.totalorder %s15_s17, 5   ;;  %s646_s16 = smov %s648_s19 }
 0x138   :  { %14 = sbr.rel (!%p12_p10) target bundleno = 2 (0x2), region = 82 }
 0x13d   :  { %378 = vsyncpa [#allocation5], 1 }
 0x13e   :  { %380 = vsyncpa [#allocation5 + $0x1], 1 }

</bundles_post_ra>
